<compile_context>
chip_gen: v7x
topology: tpu7x:2x2x1
jax: 0.10.0
libtpu: 0.0.40
codegen_flags: <defaults>
</compile_context>

<pallas_src>
import functools

import jax
import jax.numpy as jnp
from jax.experimental import pallas as pl
from jax.experimental.pallas import tpu as pltpu


def _round_up(v, m):
    return ((v + m - 1) // m) * m


def _dsnt_kernel(x_ref, probs_ref, out_ref):
    # x_ref:     (TN, L) f32 -- tile of flattened heatmaps
    # probs_ref: (2,  L) f32 -- row 0: probs_y, row 1: probs_x
    # out_ref:   (TN, 2) f32 -- (y, x) expected coordinates per heatmap
    #
    # NOTE: rows of the final (partial) tile past N hold stale data; every op
    # here is per-row (elementwise mul + lane reduce), and the output write
    # for those rows is masked by Pallas, so this stays correct.  Do NOT add
    # any cross-row op (tile-wide max/sum) without zero-filling those rows.
    x = x_ref[...]                                   # (TN, L)
    probs_y = probs_ref[0:1, :]                      # (1, L)
    probs_x = probs_ref[1:2, :]                      # (1, L)
    co_y = jnp.sum(x * probs_y, axis=-1, keepdims=True)   # (TN, 1)
    co_x = jnp.sum(x * probs_x, axis=-1, keepdims=True)   # (TN, 1)
    out_ref[...] = jnp.concatenate([co_y, co_x], axis=-1)


def make_probs(resolution):
    """Replicates the PyTorch buffer construction exactly."""
    H, W = resolution
    lin_w = jnp.linspace(-1.0, 1.0, W, dtype=jnp.float32)
    lin_h = jnp.linspace(-1.0, 1.0, H, dtype=jnp.float32)
    probs_x = jnp.tile(lin_w, (H,))      # probs_x[i*W + j] = lin_w[j]
    probs_y = jnp.repeat(lin_h, W)       # probs_y[i*W + j] = lin_h[i]
    # (2, L): row 0 -> y, row 1 -> x (matches torch.stack((co_2, co_1), -1))
    return jnp.stack([probs_y, probs_x], axis=0)


def _vmem_capacity_bytes():
    """Per-core VMEM capacity; conservative 64 MiB (v7x) if query fails."""
    try:
        cap = getattr(pltpu.get_tpu_info(), "vmem_capacity_bytes", None)
        if cap:
            return int(cap)
    except Exception:
        pass
    return 64 << 20


def _pick_tile_n(N, L, vmem_cap):
    """Largest row tile (multiple of 8) whose f32 copy fits a per-buffer
    budget of min(VMEM/4, 32 MiB) (double-buffered by Pallas -> <= VMEM/2),
    clamped to the padded problem size, then split so the grid has >= 2
    steps whenever N > 8 (lets both TCs participate on multi-core chips)."""
    bytes_per_row = _round_up(L, 128) * 4
    per_buffer_budget = min(vmem_cap // 4, 32 << 20)
    max_rows = max(8, (per_buffer_budget // bytes_per_row) // 8 * 8)
    n_up = _round_up(N, 8)
    tile_n = min(max_rows, n_up)
    if N > 8 and pl.cdiv(N, tile_n) == 1:
        tile_n = _round_up(pl.cdiv(N, 2), 8)
    return max(8, tile_n)


@functools.partial(
    jax.jit, static_argnames=("resolution", "tile_n", "min_pallas_bytes"))
def dsnt_forward(x, resolution, tile_n=None, min_pallas_bytes=1 << 20):
    """DSNT forward. x: (B, C, H, W) f32. Returns ((B, C, 2) f32, None)."""
    H, W = resolution
    B, C = x.shape[0], x.shape[1]
    assert x.shape[2] == H and x.shape[3] == W
    N = B * C
    L = H * W

    probs = make_probs(resolution)  # (2, L)

    if N * L * 4 < min_pallas_bytes:
        # Tiny inputs: custom-call overhead dominates; let XLA fuse it.
        x_flat = x.reshape(B, C, L).astype(jnp.float32)
        co_y = jnp.sum(x_flat * probs[0], axis=-1)
        co_x = jnp.sum(x_flat * probs[1], axis=-1)
        return jnp.stack((co_y, co_x), axis=-1), None

    x_flat = x.reshape(N, L).astype(jnp.float32)

    vmem_cap = _vmem_capacity_bytes()
    if tile_n is None:
        tile_n = _pick_tile_n(N, L, vmem_cap)
    assert tile_n % 8 == 0

    grid = (pl.cdiv(N, tile_n),)  # no padding; last block may be partial

    # VMEM working set (layout-padded): double-buffered x tile + probs
    # (sublane-padded to 8 rows) + out (lane-padded to 128), plus headroom.
    L_pad = _round_up(L, 128)
    vmem_bytes = 2 * (tile_n * L_pad * 4 + 8 * L_pad * 4 + tile_n * 128 * 4)
    vmem_limit = int(min(max(vmem_bytes + (4 << 20), 32 << 20),
                         vmem_cap * 3 // 4))

    cost = pl.CostEstimate(
        flops=4 * N * L,                       # 2 muls + 2 adds per element
        transcendentals=0,
        bytes_accessed=4 * N * L + 4 * 2 * L + 4 * N * 2,
    )

    out = pl.pallas_call(
        _dsnt_kernel,
        out_shape=jax.ShapeDtypeStruct((N, 2), jnp.float32),
        grid_spec=pltpu.PrefetchScalarGridSpec(
            num_scalar_prefetch=0,
            grid=grid,
            in_specs=[
                pl.BlockSpec((tile_n, L), lambda i: (i, 0)),
                pl.BlockSpec((2, L), lambda i: (0, 0)),   # constant: one DMA
            ],
            out_specs=pl.BlockSpec((tile_n, 2), lambda i: (i, 0)),
        ),
        compiler_params=pltpu.CompilerParams(
            dimension_semantics=("parallel",),
            vmem_limit_bytes=vmem_limit,
        ),
        cost_estimate=cost,
    )(x_flat, probs)

    coords = out.reshape(B, C, 2)
    return coords, None


def dsnt_reference(x, resolution):
    """Pure-JAX reference mirroring the PyTorch forward."""
    H, W = resolution
    probs = make_probs(resolution)          # (2, L): [probs_y; probs_x]
    x_flat = x.reshape(*x.shape[:-2], H * W)
    co_1 = jnp.sum(x_flat * probs[1], axis=-1)   # x coordinate
    co_2 = jnp.sum(x_flat * probs[0], axis=-1)   # y coordinate
    return jnp.stack((co_2, co_1), axis=-1), None


def _make_heatmap(key, B, C, H, W):
    logits = jax.random.normal(key, (B, C, H, W), dtype=jnp.float32)
    return jax.nn.softmax(logits.reshape(B, C, -1), axis=-1).reshape(B, C, H, W)


if __name__ == "__main__":
    key = jax.random.PRNGKey(0)
    k0, k1, k2 = jax.random.split(key, 3)

    # Main case: B=2, C=4, 16x16 heatmaps (Pallas path forced so the kernel
    # itself is exercised despite the tiny-input fallback).
    B, C, H, W = 2, 4, 16, 16
    x = _make_heatmap(k0, B, C, H, W)
    coords, _ = dsnt_forward(x, (H, W), min_pallas_bytes=0)
    coords = jax.block_until_ready(coords)
    ref_coords, _ = dsnt_reference(x, (H, W))
    assert coords.shape == (B, C, 2)
    assert jnp.allclose(coords, ref_coords, atol=1e-5, rtol=1e-5), (
        coords, ref_coords)

    # Ragged case: N = 15 -> 2 grid steps with a masked partial final block.
    B2, C2 = 3, 5
    x2 = _make_heatmap(k1, B2, C2, H, W)
    coords2, _ = dsnt_forward(x2, (H, W), min_pallas_bytes=0)
    coords2 = jax.block_until_ready(coords2)
    ref2, _ = dsnt_reference(x2, (H, W))
    assert coords2.shape == (B2, C2, 2)
    assert jnp.allclose(coords2, ref2, atol=1e-5, rtol=1e-5), (coords2, ref2)

    # Moderate case through default dispatch (2 MiB input -> Pallas path,
    # tile split so the grid has >= 2 "parallel" steps for v7x's two TCs).
    B3, C3, H3, W3 = 4, 32, 64, 64
    x3 = _make_heatmap(k2, B3, C3, H3, W3)
    coords3, _ = dsnt_forward(x3, (H3, W3))
    coords3 = jax.block_until_ready(coords3)
    ref3, _ = dsnt_reference(x3, (H3, W3))
    assert coords3.shape == (B3, C3, 2)
    assert jnp.allclose(coords3, ref3, atol=1e-5, rtol=1e-5), (coords3, ref3)

    print("KERNEL_OK")
</pallas_src>

<mosaic_0001>
module attributes {stable_mosaic.version = 11 : i64} {
  func.func @_dsnt_kernel(%arg0: i32, %arg1: memref<8x256xf32, #tpu.memory_space<vmem>>, %arg2: memref<2x256xf32, #tpu.memory_space<vmem>>, %arg3: memref<8x2xf32, #tpu.memory_space<vmem>>) attributes {dimension_semantics = [#tpu.dimension_semantics<parallel>], iteration_bounds = array<i64: 1>, scalar_prefetch = 0 : i64, scratch_operands = 0 : i64, tpu.core_type = #tpu.core_type<tc>, window_params = [{transform_indices = @transform_0, window_bounds = array<i64: 8, 256>}, {pipeline_mode = #tpu.pipeline_mode<synchronous>, transform_indices = @transform_1, window_bounds = array<i64: 2, 256>}, {transform_indices = @transform_2, window_bounds = array<i64: 8, 2>}]} {
    %c0 = arith.constant 0 : index
    %c0_0 = arith.constant 0 : index
    %0 = vector.load %arg1[%c0, %c0_0] : memref<8x256xf32, #tpu.memory_space<vmem>>, vector<8x256xf32>
    %c0_1 = arith.constant 0 : index
    %c0_2 = arith.constant 0 : index
    %1 = vector.load %arg2[%c0_1, %c0_2] : memref<2x256xf32, #tpu.memory_space<vmem>>, vector<1x256xf32>
    %c1 = arith.constant 1 : index
    %c0_3 = arith.constant 0 : index
    %2 = vector.load %arg2[%c1, %c0_3] : memref<2x256xf32, #tpu.memory_space<vmem>>, vector<1x256xf32>
    %3 = vector.broadcast %1 : vector<1x256xf32> to vector<8x256xf32>
    %4 = arith.mulf %0, %3 : vector<8x256xf32>
    %cst = arith.constant dense<0.000000e+00> : vector<8xf32>
    %5 = vector.multi_reduction <add>, %4, %cst [1] : vector<8x256xf32> to vector<8xf32>
    %6 = vector.shape_cast %5 : vector<8xf32> to vector<8x1xf32>
    %7 = vector.broadcast %2 : vector<1x256xf32> to vector<8x256xf32>
    %8 = arith.mulf %0, %7 : vector<8x256xf32>
    %cst_4 = arith.constant dense<0.000000e+00> : vector<8xf32>
    %9 = vector.multi_reduction <add>, %8, %cst_4 [1] : vector<8x256xf32> to vector<8xf32>
    %10 = vector.shape_cast %9 : vector<8xf32> to vector<8x1xf32>
    %11 = tpu.concatenate %6, %10 in 1 : vector<8x1xf32>, vector<8x1xf32> -> vector<8x2xf32>
    %c0_5 = arith.constant 0 : index
    %c0_6 = arith.constant 0 : index
    %12 = vector.load %arg3[%c0_5, %c0_6] : memref<8x2xf32, #tpu.memory_space<vmem>>, vector<8x2xf32>
    tpu.vector_store %arg3[%c0_5, %c0_6], %11 {strides = array<i32>} : memref<8x2xf32, #tpu.memory_space<vmem>>, vector<8x2xf32>,
    return
  }
  func.func @transform_0(%arg0: i32) -> (i32, i32) {
    %c0_i32 = arith.constant 0 : i32
    %c0_i32_0 = arith.constant 0 : i32
    return %arg0, %c0_i32 : i32, i32
  }
  func.func @transform_1(%arg0: i32) -> (i32, i32) {
    %c0_i32 = arith.constant 0 : i32
    %c0_i32_0 = arith.constant 0 : i32
    %c0_i32_1 = arith.constant 0 : i32
    return %c0_i32, %c0_i32_0 : i32, i32
  }
  func.func @transform_2(%arg0: i32) -> (i32, i32) {
    %c0_i32 = arith.constant 0 : i32
    %c0_i32_0 = arith.constant 0 : i32
    return %arg0, %c0_i32 : i32, i32
  }
}

</mosaic_0001>

<bundles_post_ra>
// kernel: tile.9
= control target key start
LH: loop header
LB: loop body
LE: loop exit
PB: predicated region body
PF: predicated region fallthrough
CT: control target
= control target key end

     0   :  { %s7_s6 = smov 3  ;;  %s21_s9 = smov 3  ;;  %vm4_vm0 = vcmask 130048   ;;  %vm11_vm1 = vcmask 1048448   ;;  %vm18_vm2 = vcmask 917248   ;;  %vm25_vm3 = vcmask 786048   ;;  %s128_s0 = inlined_call_operand.vmem [shape: f32[16,16], index: 0, kind: input, shape index: {}]   ;;  %s129_s1 = inlined_call_operand.vmem [shape: f32[1,256], index: 1, kind: output, shape index: {}]  }
   0x1   :  { %v66_v0 = vld [vmem:[%s128_s0 + $0x7] ss:$8 sm:%s7_s6]   ;;  %s81_s10 = smov 112   ;;  %v68_v1 = vld [vmem:[%s128_s0 + $0x5] ss:$8 sm:%s21_s9]   ;;  %s14_s13 = smov 3 }
   0x2   :  { %9 = vrot.lane.b32.xlu0 %v66_v0, %s81_s10  ;;  %s82_s14 = smov 80   ;;  %v67_v2 = vld [vmem:[%s128_s0 + $0x6] ss:$8 sm:%s14_s13]   ;;  %s28_s17 = smov 3  ;;  %vm32_vm4 = vcmask 654848   ;;  %vm39_vm5 = vcmask 523648  }
   0x3   :  { %23 = vrot.lane.b32.xlu1 %v68_v1, %s82_s14  ;;  %v69_v3 = vld [vmem:[%s128_s0 + $0x4] ss:$8 sm:%s28_s17]   ;;  %s35_s20 = smov 3  ;;  %s42_s21 = smov 3  ;;  %vm46_vm6 = vcmask 392448   ;;  %vm53_vm7 = vcmask 261248  }
   0x4   :  { %s83_s22 = smov 96   ;;  %s84_s23 = smov 64   ;;  %v70_v4 = vld [vmem:[%s128_s0 + $0x3] ss:$8 sm:%s35_s20]   ;;  %v71_v5 = vld [vmem:[%s128_s0 + $0x2] ss:$8 sm:%s42_s21]  }
   0x5   :  { %s2_s26 = smov 3  ;;  %s49_s29 = smov 3 }
   0x6   :  { %16 = vrot.lane.b32.xlu0 %v67_v2, %s83_s22  ;;  %v3_v6 = vld [vmem:[%s128_s0] ss:$8 sm:%s2_s26]   ;;  %s85_s3 = smov 48   ;;  %s86_s4 = smov 32  }
   0x7   :  { %30 = vrot.lane.b32.xlu1 %v69_v3, %s84_s23  ;;  %5 = vst.msk [vmem:[#allocation0] ss:$8 sm:$0x3] %vm4_vm0, %v3_v6   ;;  %v72_v7 = vld [vmem:[%s128_s0 + $0x1] ss:$8 sm:%s49_s29]   ;;  %s87_s0 = smov 16  }
   0xa   :  { %37 = vrot.lane.b32.xlu0 %v70_v4, %s85_s3 }
   0xb   :  { %44 = vrot.lane.b32.xlu1 %v71_v5, %s86_s4 }
   0xe   :  { %51 = vrot.lane.b32.xlu0 %v72_v7, %s87_s0 }
  0x74   :  { %v10_v8 = vpop.permute.xlu0 %9  }
  0x75   :  { %12 = vst.msk [vmem:[#allocation0] ss:$8 sm:$0x3] %vm11_vm1, %v10_v8   ;;  %v24_v9 = vpop.permute.xlu1 %23  }
  0x78   :  { %v17_v10 = vpop.permute.xlu0 %16  }
  0x79   :  { %19 = vst.msk [vmem:[#allocation0] ss:$8 sm:$0x3] %vm18_vm2, %v17_v10   ;;  %v31_v11 = vpop.permute.xlu1 %30  }
  0x7a   :  { %26 = vst.msk [vmem:[#allocation0] ss:$8 sm:$0x3] %vm25_vm3, %v24_v9  }
  0x7b   :  { %33 = vst.msk [vmem:[#allocation0] ss:$8 sm:$0x3] %vm32_vm4, %v31_v11  }
  0x7c   :  { %v38_v12 = vpop.permute.xlu0 %37  }
  0x7d   :  { %40 = vst.msk [vmem:[#allocation0] ss:$8 sm:$0x3] %vm39_vm5, %v38_v12   ;;  %v45_v13 = vpop.permute.xlu1 %44  }
  0x7e   :  { %47 = vst.msk [vmem:[#allocation0] ss:$8 sm:$0x3] %vm46_vm6, %v45_v13  }
  0x80   :  { %v52_v14 = vpop.permute.xlu0 %51  }
  0x81   :  { %54 = vst.msk [vmem:[#allocation0] ss:$8 sm:$0x3] %vm53_vm7, %v52_v14  }
  0x88   :  { %v58_v15 = vld [vmem:[#allocation0] sm:$0x1]  ;;  %v62_v16 = vld [vmem:[#allocation0 + $0x8] sm:$0x1] }
  0x89   :  { %60 = vst [vmem:[%s129_s1] sm:$0x1] %v58_v15  ;;  %73 = vst [vmem:[%s129_s1 + $0x1] sm:$0x1] %v62_v16 }

// kernel: tile.8
= control target key start
LH: loop header
LB: loop body
LE: loop exit
PB: predicated region body
PF: predicated region fallthrough
CT: control target
= control target key end

     0   :  { %s28_s0 = inlined_call_operand.vmem [shape: f32[16], index: 0, kind: input, shape index: {}]   ;;  %s29_s1 = inlined_call_operand.vmem [shape: f32[16,16], index: 1, kind: output, shape index: {}]  }
   0x1   :  { %v4_v0 = vld [vmem:[%s28_s0] ss:$0 sm:$0xff] }
   0x2   :  { %5 = vst [vmem:[%s29_s1] sm:$0xff] %v4_v0  ;;  %8 = vst [vmem:[%s29_s1 + $0x8] sm:$0xff] %v4_v0 }

// kernel: dsnt_forward.1
= control target key start
LH: loop header
LB: loop body
LE: loop exit
PB: predicated region body
PF: predicated region fallthrough
CT: control target
= control target key end

     0   :  { %v17_v0 = vlaneseq  ;;  %vm48_vm0 = vcmask 7168   ;;  %vm50_vm1 = vcmask 15360   ;;  %s87_s1 = inlined_call_operand.vmem [shape: f32[2,256], index: 1, kind: input, shape index: {}]   ;;  %s88_s0 = inlined_call_operand.vmem [shape: f32[8,256], index: 0, kind: input, shape index: {}]   ;;  %s89_s2 = inlined_call_operand.vmem [shape: f32[8,2], index: 2, kind: output, shape index: {}]  }
   0x1   :  { %v13_v2 = vld [vmem:[%s87_s1] ss:$2 sm:$0x3]  ;;  %v56_v3 = vld [vmem:[%s87_s1 + $0x1] ss:$2 sm:$0x3] }
   0x2   :  { %v18_v1 = vshrl.u32 %v17_v0, 7  ;;  %v11_v6 = vld [vmem:[%s88_s0] sm:$0xff]  ;;  %v12_v7 = vld [vmem:[%s88_s0 + $0x8] sm:$0xff] }
   0x4   :  { %v19_v4 = vsub.s32 0, %v18_v1  ;;  %v23_v5 = vsub.s32 1, %v18_v1 }
   0x6   :  { %v20_v8 = vrot.slane %v13_v2, %v19_v4  ;;  %v24_v9 = vrot.slane %v13_v2, %v23_v5  ;;  %v36_v10 = vrot.slane %v56_v3, %v19_v4  ;;  %v40_v11 = vrot.slane %v56_v3, %v23_v5 }
   0x8   :  { %v27_v12 = vmul.f32 %v20_v8, %v11_v6  ;;  %v28_v13 = vmul.f32 %v24_v9, %v12_v7  ;;  %v43_v14 = vmul.f32 %v36_v10, %v11_v6  ;;  %v44_v15 = vmul.f32 %v40_v11, %v12_v7 }
   0xa   :  { %v29_v16 = vadd.f32 %v28_v13, %v27_v12  ;;  %v45_v17 = vadd.f32 %v44_v15, %v43_v14 }
   0xc   :  { %30 = vadd.xlane.f32.xlu0 %v29_v16 }
  0x10   :  { %46 = vadd.xlane.f32.xlu0 %v45_v17 }
  0x99   :  { %v31_v18 = vpop.xlane.xlu0 %30 }
  0x9d   :  { %v47_v19 = vpop.xlane.xlu0 %46 }
  0x9e   :  { %v49_v20 = vsel %vm48_vm0, %v31_v18, %v47_v19 }
  0x9f   :  { %51 = vst.msk [vmem:[%s89_s2] sm:$0xff] %vm50_vm1, %v49_v20 }

</bundles_post_ra>
